<compile_context>
chip_gen: v6e
topology: v6e:2x2x1
jax: 0.10.0
libtpu: 0.0.40
codegen_flags: <defaults>
</compile_context>

<pallas_src>
import math

import jax
import jax.numpy as jnp
from jax.experimental import pallas as pl
from jax.experimental.pallas import tpu as pltpu

_LANES = 128


def _cosine_attenuation_kernel(cutoff: float, approx_cos: bool):
    cutoff = float(cutoff)
    scale = math.pi / cutoff              # t  = d * pi / cutoff
    half_scale = math.pi / (2.0 * cutoff)  # u  = t / 2

    # Even Taylor coefficients of cos(u) through u^10 (exact fractions).
    # On [0, pi/2] the truncation error is <= (pi/2)^12 / 12! ~ 4.8e-7 and the
    # squared result is accurate to < 1e-7 — well inside f32 tolerance.
    coeffs = (1.0, -1.0 / 2.0, 1.0 / 24.0, -1.0 / 720.0,
              1.0 / 40320.0, -1.0 / 3628800.0)

    def kernel(d_ref, o_ref):
        d = d_ref[...].astype(jnp.float32)
        if approx_cos:
            # 0.5*(cos(t)+1) == cos(t/2)^2 ; t/2 in [0, pi/2) wherever unmasked.
            u = d * half_scale
            u2 = u * u
            p = jnp.full_like(u2, coeffs[-1])
            for c in coeffs[-2::-1]:
                p = p * u2 + c
            val = p * p
        else:
            val = 0.5 * (jnp.cos(d * scale) + 1.0)
        # strict (d < cutoff) mask, matching the PyTorch module
        o_ref[...] = jnp.where(d < cutoff, val, 0.0).astype(o_ref.dtype)

    return kernel


def cosine_attenuation(d_ij: jax.Array, cutoff: float, *,
                       block_rows: int = 2048,
                       approx_cos: bool = True) -> jax.Array:
    """Apply the cosine attenuation function elementwise via a Pallas TPU kernel.

    d_ij: distance tensor, typically shape (n_pairs, 1)
    returns: same shape/dtype as d_ij
    """
    orig_shape = d_ij.shape
    orig_dtype = d_ij.dtype

    # --- lane-dense layout: flatten -> (minimal) pad -> (rows, 128) slab -----
    flat = d_ij.reshape(-1)
    n = flat.shape[0]

    itemsize = jnp.dtype(orig_dtype).itemsize
    row_align = max(8, 32 // itemsize)          # 8 rows f32, 16 bf16, 32 int8

    rows = pl.cdiv(n, _LANES)
    rows_aligned = pl.cdiv(rows, row_align) * row_align  # NOT a block multiple

    total = rows_aligned * _LANES
    pad = total - n
    if pad:
        # Pad with `cutoff` so the padded tail evaluates to exactly 0 (it is
        # sliced off below, but this keeps the slab safe to consume directly).
        flat = jnp.pad(flat, (0, pad), constant_values=cutoff)
    slab = flat.reshape(rows_aligned, _LANES)

    # Tile rows: big lane-dense blocks, sublane-aligned, never larger than slab.
    block_rows = max(row_align, (block_rows // row_align) * row_align)
    tile_rows = min(block_rows, rows_aligned)
    grid = (pl.cdiv(rows_aligned, tile_rows),)   # partial last block is masked

    spec = pl.BlockSpec((tile_rows, _LANES), lambda i: (i, 0))

    out_slab = pl.pallas_call(
        _cosine_attenuation_kernel(cutoff, approx_cos),
        out_shape=jax.ShapeDtypeStruct(slab.shape, orig_dtype),
        grid_spec=pltpu.PrefetchScalarGridSpec(
            num_scalar_prefetch=0,
            grid=grid,
            in_specs=[spec],
            out_specs=spec,
        ),
        compiler_params=pltpu.CompilerParams(
            dimension_semantics=("parallel",),
        ),
    )(slab)

    out_flat = out_slab.reshape(-1)
    if pad:
        out_flat = out_flat[:n]
    return out_flat.reshape(orig_shape)


def _reference(d_ij: jax.Array, cutoff: float) -> jax.Array:
    val = 0.5 * (jnp.cos(d_ij * jnp.pi / cutoff) + 1.0)
    return val * (d_ij < cutoff).astype(d_ij.dtype)


if __name__ == "__main__":
    cutoff = 0.5  # nanometers
    key = jax.random.PRNGKey(0)

    # Case 1: typical shape, not a multiple of 128 -> exercises pad/slice path.
    num_pairs = 300
    d_ij = jax.random.uniform(key, (num_pairs, 1), dtype=jnp.float32) * (1.2 * cutoff)
    out = jax.block_until_ready(cosine_attenuation(d_ij, cutoff))
    ref = _reference(d_ij, cutoff)
    assert out.shape == d_ij.shape and out.dtype == d_ij.dtype
    assert jnp.allclose(out, ref, atol=2e-6, rtol=0)

    # Case 2: multi-block path with a masked partial final block
    # (2500 elems -> 20 rows -> padded to 24 rows, tile_rows=8, grid=(3,)).
    d2 = jax.random.uniform(jax.random.PRNGKey(1), (2500, 1), dtype=jnp.float32) * (1.2 * cutoff)
    out2 = jax.block_until_ready(cosine_attenuation(d2, cutoff, block_rows=8))
    assert jnp.allclose(out2, _reference(d2, cutoff), atol=2e-6, rtol=0)

    # Case 3: exact jnp.cos fallback path still compiles and matches.
    out3 = jax.block_until_ready(cosine_attenuation(d_ij, cutoff, approx_cos=False))
    assert jnp.allclose(out3, ref, atol=1e-6, rtol=1e-6)

    print("KERNEL_OK")
</pallas_src>

<mosaic_0001>
module attributes {stable_mosaic.version = 11 : i64} {
  func.func @kernel(%arg0: i32, %arg1: memref<8x128xf32, #tpu.memory_space<vmem>>, %arg2: memref<8x128xf32, #tpu.memory_space<vmem>>) attributes {dimension_semantics = [#tpu.dimension_semantics<parallel>], iteration_bounds = array<i64: 1>, scalar_prefetch = 0 : i64, scratch_operands = 0 : i64, tpu.core_type = #tpu.core_type<tc>, window_params = [{transform_indices = @transform_0, window_bounds = array<i64: 8, 128>}, {transform_indices = @transform_1, window_bounds = array<i64: 8, 128>}]} {
    %c0 = arith.constant 0 : index
    %c0_0 = arith.constant 0 : index
    %0 = vector.load %arg1[%c0, %c0_0] : memref<8x128xf32, #tpu.memory_space<vmem>>, vector<8x128xf32>
    %cst = arith.constant 3.14159274 : f32
    %1 = vector.broadcast %cst : f32 to vector<8x128xf32>
    %2 = arith.mulf %0, %1 : vector<8x128xf32>
    %3 = arith.mulf %2, %2 : vector<8x128xf32>
    %cst_1 = arith.constant -2.755732E-7 : f32
    %4 = vector.broadcast %cst_1 : f32 to vector<8x128xf32>
    %5 = arith.mulf %4, %3 : vector<8x128xf32>
    %cst_2 = arith.constant 2.48015876E-5 : f32
    %6 = vector.broadcast %cst_2 : f32 to vector<8x128xf32>
    %7 = arith.addf %5, %6 : vector<8x128xf32>
    %8 = arith.mulf %7, %3 : vector<8x128xf32>
    %cst_3 = arith.constant -0.00138888892 : f32
    %9 = vector.broadcast %cst_3 : f32 to vector<8x128xf32>
    %10 = arith.addf %8, %9 : vector<8x128xf32>
    %11 = arith.mulf %10, %3 : vector<8x128xf32>
    %cst_4 = arith.constant 0.0416666679 : f32
    %12 = vector.broadcast %cst_4 : f32 to vector<8x128xf32>
    %13 = arith.addf %11, %12 : vector<8x128xf32>
    %14 = arith.mulf %13, %3 : vector<8x128xf32>
    %cst_5 = arith.constant -5.000000e-01 : f32
    %15 = vector.broadcast %cst_5 : f32 to vector<8x128xf32>
    %16 = arith.addf %14, %15 : vector<8x128xf32>
    %17 = arith.mulf %16, %3 : vector<8x128xf32>
    %cst_6 = arith.constant 1.000000e+00 : f32
    %18 = vector.broadcast %cst_6 : f32 to vector<8x128xf32>
    %19 = arith.addf %17, %18 : vector<8x128xf32>
    %20 = arith.mulf %19, %19 : vector<8x128xf32>
    %cst_7 = arith.constant 5.000000e-01 : f32
    %21 = vector.broadcast %cst_7 : f32 to vector<8x128xf32>
    %22 = arith.cmpf olt, %0, %21 : vector<8x128xf32>
    %cst_8 = arith.constant 0.000000e+00 : f32
    %23 = vector.broadcast %cst_8 : f32 to vector<8x128xf32>
    %24 = arith.select %22, %20, %23 : vector<8x128xi1>, vector<8x128xf32>
    %c0_9 = arith.constant 0 : index
    %c0_10 = arith.constant 0 : index
    %25 = vector.load %arg2[%c0_9, %c0_10] : memref<8x128xf32, #tpu.memory_space<vmem>>, vector<8x128xf32>
    tpu.vector_store %arg2[%c0_9, %c0_10], %24 {strides = array<i32>} : memref<8x128xf32, #tpu.memory_space<vmem>>, vector<8x128xf32>,
    return
  }
  func.func @transform_0(%arg0: i32) -> (i32, i32) {
    %c0_i32 = arith.constant 0 : i32
    %c0_i32_0 = arith.constant 0 : i32
    return %arg0, %c0_i32 : i32, i32
  }
  func.func @transform_1(%arg0: i32) -> (i32, i32) {
    %c0_i32 = arith.constant 0 : i32
    %c0_i32_0 = arith.constant 0 : i32
    return %arg0, %c0_i32 : i32, i32
  }
}

</mosaic_0001>

<bundles_post_ra>
// kernel: tpu_custom_call.1
= control target key start
LH: loop header
LB: loop body
LE: loop exit
PB: predicated region body
PF: predicated region fallthrough
CT: control target
= control target key end

     0   :  { %6 = vsyncpa [#allocation3], 0  ;;  %s117_s0 = inlined_call_operand.hbm [shape: f32[8,128], index: 0, kind: input, shape index: {}]   ;;  %s118_s1 = inlined_call_operand.hbm [shape: f32[8,128], index: 1, kind: output, shape index: {}]  }
   0x1   :  { %7 = vsyncpa [#allocation4], 0  ;;  %s99_s6 = smov [#allocation2]  }
   0x2   :  { %s14_s7 = sshll.u32 %s99_s6, 4  ;;  %s15_s7 = int_to_ptr.vmem [resolvable:$true] %s14_s7 }
   0x3   :  { %s63_s8 = scalar_lea.vmem %s15_s7, 128  ;;  %p68_p1 = scmp.lt.s32.totalorder %s15_s7, %s15_s7 }
   0x4   :  { %p64_p0 = scmp.ne.s32.totalorder %s15_s7, %s63_s8  ;;  %p69_p2 = scmp.lt.s32.totalorder %s63_s8, %s63_s8 }
   0x6   :  { %p70_p3 = por %p69_p2, %p68_p1 }
   0x8   :  { %p71_p4 = pnand %p70_p3, %p64_p0 }
   0xa   :  { %74 = shalt.err (!%p71_p4)
}
   0xb   :  { %17 = dma.hbm_to_vmem [thread:$0]  %s117_s0, 128, %s15_s7, [#allocation3]  }
   0xc   :  { %95 = dma.done.wait [#allocation3], 128  }
   0xd   :  { %96 = vsyncadd [#allocation3], 4294967168  ;;  %v21_v0 = vld [vmem:[#allocation2] sm:$0xff]  ;;  %s100_s11 = smov [#allocation5]  }
   0xe   :  { %v22_v1 = vmul.f32 3.1415927, %v21_v0  ;;  %s44_s12 = sshll.u32 %s100_s11, 4  ;;  %vm35_vm0 = vcmp.lt.f32.partialorder %v21_v0, 0.5  ;;  %s45_s12 = int_to_ptr.vmem [resolvable:$true] %s44_s12 }
   0xf   :  { %s75_s0 = scalar_lea.vmem %s45_s12, 128  ;;  %p80_p6 = scmp.lt.s32.totalorder %s45_s12, %s45_s12 }
  0x10   :  { %v23_v2 = vmul.f32 %v22_v1, %v22_v1  ;;  %p76_p5 = scmp.ne.s32.totalorder %s45_s12, %s75_s0  ;;  %p81_p7 = scmp.lt.s32.totalorder %s75_s0, %s75_s0 }
  0x12   :  { %v24_v3 = vmul.f32 -2.755732e-07, %v23_v2  ;;  %p82_p8 = por %p81_p7, %p80_p6 }
  0x14   :  { %v25_v4 = vadd.f32 2.4801588e-05, %v24_v3  ;;  %p83_p9 = pnand %p82_p8, %p76_p5 }
  0x16   :  { %v26_v5 = vmul.f32 %v25_v4, %v23_v2 }
  0x18   :  { %v27_v6 = vadd.f32 -0.0013888889, %v26_v5 }
  0x1a   :  { %v28_v7 = vmul.f32 %v27_v6, %v23_v2 }
  0x1c   :  { %v29_v8 = vadd.f32 0.041666668, %v28_v7 }
  0x1e   :  { %v30_v9 = vmul.f32 %v29_v8, %v23_v2 }
  0x20   :  { %v31_v10 = vadd.f32 -0.5, %v30_v9 }
  0x22   :  { %v32_v11 = vmul.f32 %v31_v10, %v23_v2 }
  0x24   :  { %v33_v12 = vadd.f32 1.0, %v32_v11 }
  0x26   :  { %v34_v13 = vmul.f32 %v33_v12, %v33_v12 }
  0x28   :  { %v36_v14 = vsel %vm35_vm0, %v34_v13, 0.0 }
  0x29   :  { %37 = vst [vmem:[#allocation5] sm:$0xff] %v36_v14 }
  0x2a   :  { %86 = shalt.err (!%p83_p9)
}
  0x2b   :  { %47 = dma.vmem_to_hbm [thread:$0]  %s45_s12, 128, %s118_s1, [#allocation4]  }
  0x2c   :  { %97 = dma.done.wait [#allocation4], 128  }
  0x2d   :  { %98 = vsyncadd [#allocation4], 4294967168 }
  0x2e   :  { %51 = vsyncpa [#allocation3], 1 }
  0x2f   :  { %52 = vsyncpa [#allocation4], 1 }

</bundles_post_ra>
